<compile_context>
chip_gen: v5e
topology: v5e:2x2
jax: 0.10.0
libtpu: 0.0.40
codegen_flags: <defaults>
</compile_context>

<pallas_src>
import math
from functools import partial

import jax
import jax.numpy as jnp
from jax.experimental import pallas as pl
from jax.experimental.pallas import tpu as pltpu


def _round_up(x, m):
    return ((x + m - 1) // m) * m


# ----------------------------------------------------------------------------
# Kernels
# ----------------------------------------------------------------------------
def _embed_kernel(x_ref, w_ref, *rest, scale, has_bias):
    # x_ref: (tm, Cin), w_ref: (Cin, tn) -- already transposed in the wrapper.
    if has_bias:
        b_ref, o_ref = rest
    else:
        (o_ref,) = rest
        b_ref = None
    y = jnp.dot(x_ref[...], w_ref[...], preferred_element_type=jnp.float32)
    if has_bias:
        y = y + b_ref[...].astype(jnp.float32)
    o_ref[...] = (y * scale).astype(o_ref.dtype)


def _embed_kernel_ktiled(x_ref, w_ref, *rest, scale, has_bias):
    # K-tiled variant: grid = (M, N, K) with K last ('arbitrary'); f32 acc scratch.
    if has_bias:
        b_ref, o_ref, acc_ref = rest
    else:
        o_ref, acc_ref = rest
        b_ref = None
    k = pl.program_id(2)

    @pl.when(k == 0)
    def _():
        acc_ref[...] = jnp.zeros_like(acc_ref)

    acc_ref[...] += jnp.dot(x_ref[...], w_ref[...],
                            preferred_element_type=jnp.float32)

    @pl.when(k == pl.num_programs(2) - 1)
    def _():
        y = acc_ref[...]
        if has_bias:
            y = y + b_ref[...].astype(jnp.float32)
        o_ref[...] = (y * scale).astype(o_ref.dtype)


# ----------------------------------------------------------------------------
# Wrapper
# ----------------------------------------------------------------------------
def embedding_module(x, weight, bias=None, *, block_m=1024, block_n=512,
                     block_k=2048, compute_dtype=None):
    """y = Linear(x; weight, bias) / sqrt(out_channels).

    x:      (..., in_channels)
    weight: (out_channels, in_channels)   -- torch nn.Linear layout
    bias:   optional (out_channels,)      -- module default is bias=False
    """
    *lead, cin = x.shape
    cout, cin_w = weight.shape
    assert cin == cin_w, (cin, cin_w)
    scale = 1.0 / math.sqrt(cout)
    out_dtype = x.dtype

    # One-time wrapper-side transpose to (Cin, Cout): the kernel sees a plain
    # (M,K)x(K,N) contraction in the MXU's native orientation.
    w_t = weight.T
    x2 = x.reshape(-1, cin)
    if compute_dtype is not None:
        x2 = x2.astype(compute_dtype)
        w_t = w_t.astype(compute_dtype)
    m = x2.shape[0]

    # ---- M tiling ('parallel') --------------------------------------------
    if m > block_m:
        tm = block_m
    elif m >= 512:
        # Split a single fat step in two so v7x's 2 TensorCores both get work;
        # on 1-TC chips (v5e/v6e) this costs one extra ~0.35 µs step only when
        # M is already large enough not to care.
        tm = _round_up(pl.cdiv(m, 2), 8)
    else:
        tm = m                      # single fat step at small sizes
    grid_m = pl.cdiv(m, tm)

    # ---- N tiling ('parallel'), lane-dense multiple-of-128 tiles -----------
    tn = cout if cout <= block_n else block_n
    grid_n = pl.cdiv(cout, tn)

    # ---- K tiling ('arbitrary', only when Cin is too large to hold whole) --
    tk = cin if cin <= block_k else block_k
    grid_k = pl.cdiv(cin, tk)

    has_bias = bias is not None
    bias2 = None if bias is None else bias.reshape(1, cout)

    def _single_buffered_spec(block_shape, index_map):
        # Constant-index block (never re-fetched): one buffer is enough.
        try:
            return pl.BlockSpec(block_shape, index_map,
                                pipeline_mode=pl.Buffered(1))
        except TypeError:
            return pl.BlockSpec(block_shape, index_map)

    def _run(single_buffer_weight):
        if grid_k == 1:
            grid = (grid_m, grid_n)
            x_spec = pl.BlockSpec((tm, cin), lambda i, j: (i, 0))
            w_map = lambda i, j: (0, j)
            if single_buffer_weight and grid_n == 1:
                w_spec = _single_buffered_spec((cin, tn), w_map)
            else:
                w_spec = pl.BlockSpec((cin, tn), w_map)
            o_spec = pl.BlockSpec((tm, tn), lambda i, j: (i, j))
            in_specs = [x_spec, w_spec]
            args = [x2, w_t]
            if has_bias:
                in_specs.append(pl.BlockSpec((1, tn), lambda i, j: (0, j)))
                args.append(bias2)
            kernel = partial(_embed_kernel, scale=scale, has_bias=has_bias)
            scratch = []
            semantics = ("parallel", "parallel")
        else:
            grid = (grid_m, grid_n, grid_k)
            x_spec = pl.BlockSpec((tm, tk), lambda i, j, k: (i, k))
            w_spec = pl.BlockSpec((tk, tn), lambda i, j, k: (k, j))
            o_spec = pl.BlockSpec((tm, tn), lambda i, j, k: (i, j))
            in_specs = [x_spec, w_spec]
            args = [x2, w_t]
            if has_bias:
                in_specs.append(pl.BlockSpec((1, tn), lambda i, j, k: (0, j)))
                args.append(bias2)
            kernel = partial(_embed_kernel_ktiled, scale=scale,
                             has_bias=has_bias)
            scratch = [pltpu.VMEM((tm, tn), jnp.float32)]
            semantics = ("parallel", "parallel", "arbitrary")

        # Rough double-buffered working-set estimate; only raise the scoped
        # VMEM limit when needed, and stay under v7x's 64 MiB physical VMEM.
        in_bytes = x2.dtype.itemsize
        out_bytes = jnp.dtype(out_dtype).itemsize
        est = (2 * tm * tk * in_bytes          # x (double-buffered)
               + 2 * tk * tn * in_bytes        # weight (worst case)
               + 2 * tm * tn * out_bytes       # output (double-buffered)
               + tm * tn * 4)                  # f32 accumulator scratch
        params = {"dimension_semantics": semantics}
        if est > (32 << 20):
            params["vmem_limit_bytes"] = int(min(est + (8 << 20), 60 << 20))

        out = pl.pallas_call(
            kernel,
            out_shape=jax.ShapeDtypeStruct((m, cout), out_dtype),
            grid_spec=pltpu.PrefetchScalarGridSpec(
                num_scalar_prefetch=0,
                grid=grid,
                in_specs=in_specs,
                out_specs=o_spec,
                scratch_shapes=scratch,
            ),
            compiler_params=pltpu.CompilerParams(**params),
        )(*args)
        return out.reshape(*lead, cout)

    if grid_k == 1 and grid_n == 1:
        try:
            return _run(single_buffer_weight=True)
        except Exception:
            # Installed jax rejected Buffered(1): fall back to default buffering.
            return _run(single_buffer_weight=False)
    return _run(single_buffer_weight=False)


# ----------------------------------------------------------------------------
# Pure-JAX reference.
# ----------------------------------------------------------------------------
def _embedding_ref(x, weight, bias=None):
    cout = weight.shape[0]
    y = x @ weight.T
    if bias is not None:
        y = y + bias
    return y / math.sqrt(cout)


if __name__ == "__main__":
    key = jax.random.PRNGKey(0)
    k1, k2, k3, k4, k5 = jax.random.split(key, 5)

    # --- 1) Demo shape: embed 32-dim node features into 128 dims, B=2, S=8 ---
    B, S, Cin, Cout = 2, 8, 32, 128
    x = jax.random.normal(k1, (B, S, Cin), dtype=jnp.float32)
    w = jax.random.normal(k2, (Cout, Cin), dtype=jnp.float32) * (1.0 / math.sqrt(Cin))

    out = jax.block_until_ready(embedding_module(x, w))      # bias=False (module default)
    ref = jax.block_until_ready(_embedding_ref(x, w))
    assert out.shape == (B, S, Cout), out.shape
    assert jnp.allclose(out, ref, atol=1e-3, rtol=1e-3), float(jnp.max(jnp.abs(out - ref)))

    # --- 2) Bias path (simple grid) ------------------------------------------
    b = jax.random.normal(k3, (Cout,), dtype=jnp.float32)
    out_b = jax.block_until_ready(embedding_module(x, w, b))
    ref_b = jax.block_until_ready(_embedding_ref(x, w, b))
    assert jnp.allclose(out_b, ref_b, atol=1e-3, rtol=1e-3)

    # --- 3) Larger shape with small block overrides to exercise the
    #        M-split / N-tiled / K-tiled (accumulator) code paths ------------
    B2, S2, Cin2, Cout2 = 4, 160, 256, 256    # m = 640 -> 2 M-steps
    x2 = jax.random.normal(k4, (B2, S2, Cin2), dtype=jnp.float32)
    w2 = jax.random.normal(k5, (Cout2, Cin2), dtype=jnp.float32) * (1.0 / math.sqrt(Cin2))
    out2 = jax.block_until_ready(
        embedding_module(x2, w2, block_m=1024, block_n=128, block_k=128))
    ref2 = jax.block_until_ready(_embedding_ref(x2, w2))
    assert out2.shape == (B2, S2, Cout2), out2.shape
    assert jnp.allclose(out2, ref2, atol=1e-3, rtol=1e-3), \
        float(jnp.max(jnp.abs(out2 - ref2)))

    print("KERNEL_OK")
</pallas_src>

<mosaic_0001>
module attributes {stable_mosaic.version = 11 : i64} {
  func.func @_embed_kernel(%arg0: i32, %arg1: i32, %arg2: memref<16x32xf32, #tpu.memory_space<vmem>>, %arg3: memref<32x128xf32, #tpu.memory_space<vmem>>, %arg4: memref<16x128xf32, #tpu.memory_space<vmem>>) attributes {dimension_semantics = [#tpu.dimension_semantics<parallel>, #tpu.dimension_semantics<parallel>], iteration_bounds = array<i64: 1, 1>, scalar_prefetch = 0 : i64, scratch_operands = 0 : i64, tpu.core_type = #tpu.core_type<tc>, window_params = [{transform_indices = @transform_0, window_bounds = array<i64: 16, 32>}, {pipeline_mode = #tpu.pipeline_mode<synchronous>, transform_indices = @transform_1, window_bounds = array<i64: 32, 128>}, {transform_indices = @transform_2, window_bounds = array<i64: 16, 128>}]} {
    %c0 = arith.constant 0 : index
    %c0_0 = arith.constant 0 : index
    %0 = vector.load %arg2[%c0, %c0_0] : memref<16x32xf32, #tpu.memory_space<vmem>>, vector<16x32xf32>
    %c0_1 = arith.constant 0 : index
    %c0_2 = arith.constant 0 : index
    %1 = vector.load %arg3[%c0_1, %c0_2] : memref<32x128xf32, #tpu.memory_space<vmem>>, vector<32x128xf32>
    %cst = arith.constant dense<0.000000e+00> : vector<16x128xf32>
    %2 = tpu.matmul %0, %1, %cst {dimension_numbers = #tpu.dot_dimension_numbers<[1], [0], [0], [1], [0, 0, 1, 1], [], []>} : vector<16x32xf32>, vector<32x128xf32>, vector<16x128xf32> -> vector<16x128xf32>
    %cst_3 = arith.constant 0.0883883461 : f32
    %3 = vector.broadcast %cst_3 : f32 to vector<16x128xf32>
    %4 = arith.mulf %2, %3 : vector<16x128xf32>
    %c0_4 = arith.constant 0 : index
    %c0_5 = arith.constant 0 : index
    %5 = vector.load %arg4[%c0_4, %c0_5] : memref<16x128xf32, #tpu.memory_space<vmem>>, vector<16x128xf32>
    tpu.vector_store %arg4[%c0_4, %c0_5], %4 {strides = array<i32>} : memref<16x128xf32, #tpu.memory_space<vmem>>, vector<16x128xf32>,
    return
  }
  func.func @transform_0(%arg0: i32, %arg1: i32) -> (i32, i32) {
    %c0_i32 = arith.constant 0 : i32
    %c0_i32_0 = arith.constant 0 : i32
    return %arg0, %c0_i32 : i32, i32
  }
  func.func @transform_1(%arg0: i32, %arg1: i32) -> (i32, i32) {
    %c0_i32 = arith.constant 0 : i32
    %c0_i32_0 = arith.constant 0 : i32
    return %c0_i32, %arg1 : i32, i32
  }
  func.func @transform_2(%arg0: i32, %arg1: i32) -> (i32, i32) {
    %c0_i32 = arith.constant 0 : i32
    return %arg0, %arg1 : i32, i32
  }
}

module attributes {stable_mosaic.version = 11 : i64} {
  func.func @_embed_kernel(%arg0: i32, %arg1: i32, %arg2: memref<16x32xf32, #tpu.memory_space<vmem>>, %arg3: memref<32x128xf32, #tpu.memory_space<vmem>>, %arg4: memref<16x128xf32, #tpu.memory_space<vmem>>) attributes {dimension_semantics = [#tpu.dimension_semantics<parallel>, #tpu.dimension_semantics<parallel>], iteration_bounds = array<i64: 1, 1>, scalar_prefetch = 0 : i64, scratch_operands = 0 : i64, tpu.core_type = #tpu.core_type<tc>, window_params = [{transform_indices = @transform_0, window_bounds = array<i64: 16, 32>}, {transform_indices = @transform_1, window_bounds = array<i64: 32, 128>}, {transform_indices = @transform_2, window_bounds = array<i64: 16, 128>}]} {
    %c0 = arith.constant 0 : index
    %c0_0 = arith.constant 0 : index
    %0 = vector.load %arg2[%c0, %c0_0] : memref<16x32xf32, #tpu.memory_space<vmem>>, vector<16x32xf32>
    %c0_1 = arith.constant 0 : index
    %c0_2 = arith.constant 0 : index
    %1 = vector.load %arg3[%c0_1, %c0_2] : memref<32x128xf32, #tpu.memory_space<vmem>>, vector<32x128xf32>
    %cst = arith.constant dense<0.000000e+00> : vector<16x128xf32>
    %2 = tpu.matmul %0, %1, %cst {dimension_numbers = #tpu.dot_dimension_numbers<[1], [0], [0], [1], [0, 0, 1, 1], [], []>} : vector<16x32xf32>, vector<32x128xf32>, vector<16x128xf32> -> vector<16x128xf32>
    %cst_3 = arith.constant 0.0883883461 : f32
    %3 = vector.broadcast %cst_3 : f32 to vector<16x128xf32>
    %4 = arith.mulf %2, %3 : vector<16x128xf32>
    %c0_4 = arith.constant 0 : index
    %c0_5 = arith.constant 0 : index
    %5 = vector.load %arg4[%c0_4, %c0_5] : memref<16x128xf32, #tpu.memory_space<vmem>>, vector<16x128xf32>
    tpu.vector_store %arg4[%c0_4, %c0_5], %4 {strides = array<i32>} : memref<16x128xf32, #tpu.memory_space<vmem>>, vector<16x128xf32>,
    return
  }
  func.func @transform_0(%arg0: i32, %arg1: i32) -> (i32, i32) {
    %c0_i32 = arith.constant 0 : i32
    %c0_i32_0 = arith.constant 0 : i32
    return %arg0, %c0_i32 : i32, i32
  }
  func.func @transform_1(%arg0: i32, %arg1: i32) -> (i32, i32) {
    %c0_i32 = arith.constant 0 : i32
    %c0_i32_0 = arith.constant 0 : i32
    return %c0_i32, %arg1 : i32, i32
  }
  func.func @transform_2(%arg0: i32, %arg1: i32) -> (i32, i32) {
    %c0_i32 = arith.constant 0 : i32
    return %arg0, %arg1 : i32, i32
  }
}

</mosaic_0001>

<bundles_post_ra>
// kernel: tpu_custom_call.1
= control target key start
LH: loop header
LB: loop body
LE: loop exit
PB: predicated region body
PF: predicated region fallthrough
CT: control target
= control target key end

     0   :  { %7 = vsyncpa [#allocation3], 0  ;;  %s231_s0 = inlined_call_operand.hbm [shape: f32[16,32], index: 0, kind: input, shape index: {}]   ;;  %s232_s1 = inlined_call_operand.hbm [shape: f32[32,128], index: 1, kind: input, shape index: {}]   ;;  %s233_s2 = inlined_call_operand.hbm [shape: f32[16,128], index: 2, kind: output, shape index: {}]  }
   0x1   :  { %8 = vsyncpa [#allocation6], 0 }
   0x2   :  { %9 = vsyncpa [#allocation4], 0  ;;  %s14_s11 = sshll.u32 %s231_s0, 4  ;;  %s193_s12 = smov [#allocation2]   ;;  %s15_s11 = int_to_ptr.hbm [resolvable:$true] %s14_s11 }
   0x3   :  { %s16_s13 = sshll.u32 %s193_s12, 4  ;;  %s27_s16 = sshll.u32 %s232_s1, 4  ;;  %s17_s13 = int_to_ptr.vmem [resolvable:$true] %s16_s13  ;;  %s28_s16 = int_to_ptr.hbm [resolvable:$true] %s27_s16 }
   0x4   :  { %s194_s17 = smov 128   ;;  %s195_s18 = smov 8  }
   0x5   :  { %22 = dma.hbm_to_vmem [thread:$0]  %s15_s11, 256, %s17_s13, [#allocation3], %s194_s17, %s194_s17, %s195_s18  }
   0x6   :  { %s196_s19 = smov [#allocation5]  }
   0x7   :  { %s29_s20 = sshll.u32 %s196_s19, 4  ;;  %s30_s20 = int_to_ptr.vmem [resolvable:$true] %s29_s20 }
   0x8   :  { %35 = dma.hbm_to_vmem [thread:$0]  %s28_s16, 512, %s30_s20, [#allocation6], %s194_s17, %s194_s17, %s195_s18  }
   0x9   :  { %187 = dma.done.wait [#allocation3], 256  }
   0xa   :  { %188 = vsyncadd [#allocation3], 4294967040 }
   0xb   :  { %189 = dma.done.wait [#allocation6], 512  }
   0xc   :  { %190 = vsyncadd [#allocation6], 4294966784  ;;  %v49_v0 = vld [vmem:[#allocation5 + $0x18] sm:$0xff]  ;;  %v48_v1 = vld [vmem:[#allocation5 + $0x10] sm:$0xff]  ;;  %vm50_vm0 = vcmask 261120   ;;  %s197_s0 = smov [#allocation7]  }
   0xd   :  { %69 = vmatpush.msra.mxu0 %v49_v0  ;;  %106 = vmatpush.msra.mxu1 %v49_v0  ;;  %v47_v2 = vld [vmem:[#allocation5 + $0x8] sm:$0xff]  ;;  %v46_v3 = vld [vmem:[#allocation5] sm:$0xff]  ;;  %v44_v4 = vld [vmem:[#allocation2] sm:$0xff]  ;;  %s88_s1 = sshll.u32 %s197_s0, 4  ;;  %s90_s23 = sshll.u32 %s233_s2, 4  ;;  %s89_s1 = int_to_ptr.vmem [resolvable:$true] %s88_s1  ;;  %s91_s23 = int_to_ptr.hbm [resolvable:$true] %s90_s23 }
   0xe   :  { %v45_v5 = vld [vmem:[#allocation2 + $0x8] sm:$0xff] }
   0xf   :  { %70 = vmatpush.msra.mxu0 %v48_v1  ;;  %107 = vmatpush.msra.mxu1 %v48_v1 }
  0x11   :  { %71 = vmatpush.msra.mxu0 %v47_v2  ;;  %108 = vmatpush.msra.mxu1 %v47_v2 }
  0x13   :  { %72 = vmatpush.msra.mxu0 %v46_v3  ;;  %109 = vmatpush.msra.mxu1 %v46_v3 }
  0x14   :  { %104 = vmatmul.msk.f32.vlgmr.msra.gmra.mxu0 %vm50_vm0, %v44_v4  ;;  %105 = vmatmul.msk.f32.vlgmr.msra.gmra.mxu1 %vm50_vm0, %v45_v5 }
  0x91   :  { %v74_v6 = vpop.f32.mrf.mxu0  ;;  %v77_v7 = vpop.f32.mrf.mxu1 }
  0x92   :  { %v80_v8 = vmul.f32 0.088388346, %v74_v6  ;;  %v81_v9 = vmul.f32 0.088388346, %v77_v7 }
  0x94   :  { %82 = vst [vmem:[#allocation7] sm:$0xff] %v80_v8 }
  0x95   :  { %83 = vst [vmem:[#allocation7 + $0x8] sm:$0xff] %v81_v9 }
  0x96   :  { %96 = dma.vmem_to_hbm [thread:$0]  %s89_s1, 256, %s91_s23, [#allocation4], %s194_s17, %s194_s17, %s195_s18  }
  0x97   :  { %191 = dma.done.wait [#allocation4], 256  }
  0x98   :  { %192 = vsyncadd [#allocation4], 4294967040 }
  0x99   :  { %101 = vsyncpa [#allocation3], 1 }
  0x9a   :  { %102 = vsyncpa [#allocation6], 1 }
  0x9b   :  { %103 = vsyncpa [#allocation4], 1 }

// kernel: tpu_custom_call.1
= control target key start
LH: loop header
LB: loop body
LE: loop exit
PB: predicated region body
PF: predicated region fallthrough
CT: control target
= control target key end

     0   :  { %7 = vsyncpa [#allocation3], 0  ;;  %s231_s0 = inlined_call_operand.hbm [shape: f32[16,32], index: 0, kind: input, shape index: {}]   ;;  %s232_s1 = inlined_call_operand.hbm [shape: f32[32,128], index: 1, kind: input, shape index: {}]   ;;  %s233_s2 = inlined_call_operand.hbm [shape: f32[16,128], index: 2, kind: output, shape index: {}]  }
   0x1   :  { %8 = vsyncpa [#allocation6], 0 }
   0x2   :  { %9 = vsyncpa [#allocation4], 0  ;;  %s14_s11 = sshll.u32 %s231_s0, 4  ;;  %s193_s12 = smov [#allocation2]   ;;  %s15_s11 = int_to_ptr.hbm [resolvable:$true] %s14_s11 }
   0x3   :  { %s16_s13 = sshll.u32 %s193_s12, 4  ;;  %s27_s16 = sshll.u32 %s232_s1, 4  ;;  %s17_s13 = int_to_ptr.vmem [resolvable:$true] %s16_s13  ;;  %s28_s16 = int_to_ptr.hbm [resolvable:$true] %s27_s16 }
   0x4   :  { %s194_s17 = smov 128   ;;  %s195_s18 = smov 8  }
   0x5   :  { %22 = dma.hbm_to_vmem [thread:$0]  %s15_s11, 256, %s17_s13, [#allocation3], %s194_s17, %s194_s17, %s195_s18  }
   0x6   :  { %s196_s19 = smov [#allocation5]  }
   0x7   :  { %s29_s20 = sshll.u32 %s196_s19, 4  ;;  %s30_s20 = int_to_ptr.vmem [resolvable:$true] %s29_s20 }
   0x8   :  { %35 = dma.hbm_to_vmem [thread:$0]  %s28_s16, 512, %s30_s20, [#allocation6], %s194_s17, %s194_s17, %s195_s18  }
   0x9   :  { %187 = dma.done.wait [#allocation3], 256  }
   0xa   :  { %188 = vsyncadd [#allocation3], 4294967040 }
   0xb   :  { %189 = dma.done.wait [#allocation6], 512  }
   0xc   :  { %190 = vsyncadd [#allocation6], 4294966784  ;;  %v49_v0 = vld [vmem:[#allocation5 + $0x18] sm:$0xff]  ;;  %v48_v1 = vld [vmem:[#allocation5 + $0x10] sm:$0xff]  ;;  %vm50_vm0 = vcmask 261120   ;;  %s197_s0 = smov [#allocation7]  }
   0xd   :  { %69 = vmatpush.msra.mxu0 %v49_v0  ;;  %106 = vmatpush.msra.mxu1 %v49_v0  ;;  %v47_v2 = vld [vmem:[#allocation5 + $0x8] sm:$0xff]  ;;  %v46_v3 = vld [vmem:[#allocation5] sm:$0xff]  ;;  %v44_v4 = vld [vmem:[#allocation2] sm:$0xff]  ;;  %s88_s1 = sshll.u32 %s197_s0, 4  ;;  %s90_s23 = sshll.u32 %s233_s2, 4  ;;  %s89_s1 = int_to_ptr.vmem [resolvable:$true] %s88_s1  ;;  %s91_s23 = int_to_ptr.hbm [resolvable:$true] %s90_s23 }
   0xe   :  { %v45_v5 = vld [vmem:[#allocation2 + $0x8] sm:$0xff] }
   0xf   :  { %70 = vmatpush.msra.mxu0 %v48_v1  ;;  %107 = vmatpush.msra.mxu1 %v48_v1 }
  0x11   :  { %71 = vmatpush.msra.mxu0 %v47_v2  ;;  %108 = vmatpush.msra.mxu1 %v47_v2 }
  0x13   :  { %72 = vmatpush.msra.mxu0 %v46_v3  ;;  %109 = vmatpush.msra.mxu1 %v46_v3 }
  0x14   :  { %104 = vmatmul.msk.f32.vlgmr.msra.gmra.mxu0 %vm50_vm0, %v44_v4  ;;  %105 = vmatmul.msk.f32.vlgmr.msra.gmra.mxu1 %vm50_vm0, %v45_v5 }
  0x91   :  { %v74_v6 = vpop.f32.mrf.mxu0  ;;  %v77_v7 = vpop.f32.mrf.mxu1 }
  0x92   :  { %v80_v8 = vmul.f32 0.088388346, %v74_v6  ;;  %v81_v9 = vmul.f32 0.088388346, %v77_v7 }
  0x94   :  { %82 = vst [vmem:[#allocation7] sm:$0xff] %v80_v8 }
  0x95   :  { %83 = vst [vmem:[#allocation7 + $0x8] sm:$0xff] %v81_v9 }
  0x96   :  { %96 = dma.vmem_to_hbm [thread:$0]  %s89_s1, 256, %s91_s23, [#allocation4], %s194_s17, %s194_s17, %s195_s18  }
  0x97   :  { %191 = dma.done.wait [#allocation4], 256  }
  0x98   :  { %192 = vsyncadd [#allocation4], 4294967040 }
  0x99   :  { %101 = vsyncpa [#allocation3], 1 }
  0x9a   :  { %102 = vsyncpa [#allocation6], 1 }
  0x9b   :  { %103 = vsyncpa [#allocation4], 1 }

</bundles_post_ra>
